<compile_context>
chip_gen: v7x
topology: tpu7x:2x2x1
jax: 0.10.0
libtpu: 0.0.40
codegen_flags: <defaults>
</compile_context>

<pallas_src>
import functools

import jax
import jax.numpy as jnp
from jax.experimental import pallas as pl
from jax.experimental.pallas import tpu as pltpu


# ----------------------------------------------------------------------------
# Hardware-aware sizing helpers
# ----------------------------------------------------------------------------
def _tpu_generation():
  """Best-effort TPU generation (4/5/6/7); defaults to 6 if undetectable."""
  try:
    kind = jax.devices()[0].device_kind.lower()
  except Exception:  # pragma: no cover
    return 6
  for g in (7, 6, 5, 4):
    if f"v{g}" in kind:
      return g
  return 6


def _vmem_limits(gen):
  """(scoped vmem_limit_bytes, per-step tile byte budget) per generation."""
  if gen >= 7:      # v7x: 64 MiB physical VMEM per TensorCore -> stay well under
    return 40 * 1024 * 1024, 12 * 1024 * 1024
  # v5e / v6e: 128 MiB physical VMEM and lower HBM BW -> bigger tiles pay off
  return 64 * 1024 * 1024, 32 * 1024 * 1024


def _sublane_multiple(dtype):
  itemsize = jnp.dtype(dtype).itemsize
  return {4: 8, 2: 16, 1: 32}.get(itemsize, 8)


def _round_up(x, m):
  return ((x + m - 1) // m) * m


def _choose_tile_n(n, row_width, num_views, dtype, tile_budget, f32_temps_per_row):
  """Bytes-based row tile.

  Targets a multi-MiB per-step input DMA (HBM roofline / ~0.35us-per-step
  overhead amortization) while keeping the double-buffered HBM tiles plus the
  f32 in-kernel temporaries inside the per-generation VMEM tile budget, and
  keeps the grid at >= 2 steps so both v7x TensorCores get work.
  """
  itemsize = jnp.dtype(dtype).itemsize
  sub = _sublane_multiple(dtype)
  per_row = 2 * (num_views + 1) * row_width * itemsize + 4 * f32_temps_per_row
  tn = max(sub, tile_budget // max(per_row, 1))
  tn = min(tn, 16384)                          # bytes decide; no hard 1024 cap
  if n >= 2 * sub:                             # >= 2 grid steps (v7x megacore)
    tn = min(tn, _round_up((n + 1) // 2, sub))
  tn = max(sub, (tn // sub) * sub)
  if tn >= n:
    return n                                   # whole array: block dim == full dim
  return tn


def _emb_block_spec(tile_n, cols, gen):
  """Input-view BlockSpec; on v7x request 3-deep buffering (per-step DMAs are
  ~2.3x shorter there, so fixed DMA-issue overhead becomes the limiter)."""
  index_map = lambda i: (i, 0)
  if gen >= 7 and hasattr(pl, "Buffered"):
    try:
      return pl.BlockSpec((tile_n, cols), index_map, pipeline_mode=pl.Buffered(3))
    except TypeError:  # older BlockSpec signature without pipeline_mode
      pass
  return pl.BlockSpec((tile_n, cols), index_map)


# ----------------------------------------------------------------------------
# Kernels
# ----------------------------------------------------------------------------
def _attention_fusion_kernel(num_views, act_dtype, *refs):
  """Attention fusion over `num_views` per-view embedding tiles.

  refs = (emb_0 ... emb_{V-1}, w1, b1, w2, w3_row, out)
    emb_v : (TN, D)   embedding dtype
    w1    : (D, H)    MXU dtype (bf16 unless exact)
    b1    : (1, H)    f32
    w2    : (H, 32)   MXU dtype
    w3_row: (1, 32)   f32  (applied on the VPU, not the MXU)
    out   : (TN, D)
  """
  emb_refs = refs[:num_views]
  w1_ref, b1_ref, w2_ref, w3_ref, out_ref = refs[num_views:]
  mxu_dtype = w1_ref.dtype
  tn = out_ref.shape[0]

  # Per-view score MLP (no row concatenation: the tiny weights stay resident
  # and each view tile is read straight from its own VMEM block).
  scores = []
  for v in range(num_views):
    x = emb_refs[v][...].astype(mxu_dtype)
    h = jnp.dot(x, w1_ref[...], preferred_element_type=jnp.float32)
    h = jnp.tanh((h + b1_ref[...]).astype(act_dtype))
    h = jnp.dot(h.astype(mxu_dtype), w2_ref[...],
                preferred_element_type=jnp.float32)
    h = jnp.tanh(h.astype(act_dtype)).astype(jnp.float32)
    # Width-1 "matmul" as VPU multiply + lane reduction (skip an MXU pass).
    scores.append(jnp.sum(h * w3_ref[...], axis=-1, keepdims=True))     # (TN,1)

  # Row-wise max over views: pure VPU on (TN,1) columns.
  m = scores[0]
  for v in range(1, num_views):
    m = jnp.maximum(m, scores[v])

  # Pack the V (TN,1) score columns into a single (TN,V) block so exp runs once
  # on one block instead of V times on 1/128-lane-dense columns (EUP is the
  # binding slot here, not HBM).
  lane = jax.lax.broadcasted_iota(jnp.int32, (tn, num_views), 1)
  packed = jnp.broadcast_to(scores[0] - m, (tn, num_views))
  for v in range(1, num_views):
    packed = jnp.where(lane == v, scores[v] - m, packed)
  e = jnp.exp(packed.astype(act_dtype)).astype(jnp.float32)             # (TN,V)
  e_cols = [e[:, v:v + 1] for v in range(num_views)]

  denom = e_cols[0]
  for v in range(1, num_views):
    denom = denom + e_cols[v]
  inv = 1.0 / denom                       # exact reciprocal (tiny (TN,1) op)

  # Weighted sum over views; each view tile re-read from VMEM; f32 accumulate.
  acc = (e_cols[0] * inv) * emb_refs[0][...].astype(jnp.float32)
  for v in range(1, num_views):
    acc = acc + (e_cols[v] * inv) * emb_refs[v][...].astype(jnp.float32)
  out_ref[...] = acc.astype(out_ref.dtype)


def _weighted_sum_kernel(num_views, *refs):
  """out = sum_v w[v] * emb_v.

  refs = (w (V,) SMEM, emb_0 ... emb_{V-1} (TN, C), out (TN, C))
  """
  w_ref = refs[0]
  emb_refs = refs[1:1 + num_views]
  out_ref = refs[-1]

  acc = w_ref[0] * emb_refs[0][...].astype(jnp.float32)
  for v in range(1, num_views):
    acc = acc + w_ref[v] * emb_refs[v][...].astype(jnp.float32)
  out_ref[...] = acc.astype(out_ref.dtype)


# ----------------------------------------------------------------------------
# Wrappers (pallas_call plumbing)
# ----------------------------------------------------------------------------
def attention_fusion(emb_list, w1, b1, w2, w3, *, tile_n=None, exact=False):
  """out = sum_v softmax_v(MLP(emb_v)) * emb_v."""
  num_views = len(emb_list)
  n, d = emb_list[0].shape
  dt = emb_list[0].dtype
  hidden = w1.shape[1]

  gen = _tpu_generation()
  vmem_limit, tile_budget = _vmem_limits(gen)

  # Score-MLP compute dtypes: bf16 MXU operands everywhere (scores feed a
  # softmax; bf16 is plenty); bf16 tanh/exp only where the EUP/VPU have bf16
  # (v6e/v7x), f32 on v5e.  `exact=True` keeps the whole score path in f32.
  if exact:
    mxu_dtype, act_dtype = jnp.float32, jnp.float32
  else:
    mxu_dtype = jnp.bfloat16
    act_dtype = jnp.bfloat16 if gen >= 6 else jnp.float32

  if tile_n is None:
    f32_temps = 2 * (hidden + 32) + 3 * d + 4 * num_views + 16
    tile_n = _choose_tile_n(n, d, num_views, dt, tile_budget, f32_temps)
  grid = (pl.cdiv(n, tile_n),)     # partial last block; OOB rows are discarded

  w1c = w1.astype(mxu_dtype)
  w2c = w2.astype(mxu_dtype)
  b1c = b1.reshape(1, -1).astype(jnp.float32)
  w3r = w3.reshape(1, -1).astype(jnp.float32)

  full = lambda i: (0, 0)
  emb_specs = [_emb_block_spec(tile_n, d, gen) for _ in range(num_views)]
  return pl.pallas_call(
      functools.partial(_attention_fusion_kernel, num_views, act_dtype),
      out_shape=jax.ShapeDtypeStruct((n, d), dt),
      grid_spec=pltpu.PrefetchScalarGridSpec(
          num_scalar_prefetch=0,
          grid=grid,
          in_specs=emb_specs + [
              pl.BlockSpec((d, hidden), full),
              pl.BlockSpec((1, hidden), full),
              pl.BlockSpec((hidden, 32), full),
              pl.BlockSpec((1, 32), full),
          ],
          out_specs=pl.BlockSpec((tile_n, d), lambda i: (i, 0)),
      ),
      compiler_params=pltpu.CompilerParams(
          dimension_semantics=("parallel",),
          vmem_limit_bytes=vmem_limit),
  )(*emb_list, w1c, b1c, w2c, w3r)


def weighted_sum_fusion(weights, emb_list, *, tile_n=None):
  """out = sum_v w[v] * emb_v   (average / learned-weight fusion)."""
  num_views = len(emb_list)
  n, d = emb_list[0].shape
  dt = emb_list[0].dtype

  gen = _tpu_generation()
  vmem_limit, tile_budget = _vmem_limits(gen)

  # Purely elementwise op: re-layout each contiguous (N, D) view to a
  # lane-dense (rows, 128*k) shape so every load/store is an unmasked
  # full-lane vld/vst (the biggest single lever when D < 128).
  total = n * d
  lane_width = next((c for c in (512, 256, 128) if total % c == 0), 0)
  if lane_width:
    rows, cols = total // lane_width, lane_width
    embs = [e.reshape(rows, cols) for e in emb_list]
  else:
    rows, cols = n, d
    embs = list(emb_list)

  if tile_n is None:
    tile_n = _choose_tile_n(rows, cols, num_views, dt, tile_budget, 2 * cols)
  grid = (pl.cdiv(rows, tile_n),)  # partial last block; OOB rows are discarded

  emb_specs = [_emb_block_spec(tile_n, cols, gen) for _ in range(num_views)]
  out = pl.pallas_call(
      functools.partial(_weighted_sum_kernel, num_views),
      out_shape=jax.ShapeDtypeStruct((rows, cols), dt),
      grid_spec=pltpu.PrefetchScalarGridSpec(
          num_scalar_prefetch=0,
          grid=grid,
          in_specs=[pl.BlockSpec(memory_space=pltpu.MemorySpace.SMEM)] + emb_specs,
          out_specs=pl.BlockSpec((tile_n, cols), lambda i: (i, 0)),
      ),
      compiler_params=pltpu.CompilerParams(
          dimension_semantics=("parallel",),
          vmem_limit_bytes=vmem_limit),
  )(weights.astype(jnp.float32), *embs)
  return out.reshape(n, d) if lane_width else out


class FusionLayerPallas:
  """JAX/Pallas port of TrustworthyNet FusionLayer (forward only)."""

  def __init__(self, num_views, fusion_type, in_size, hidden_size=64, key=None):
    self.fusion_type = fusion_type
    self.num_views = num_views
    if key is None:
      key = jax.random.PRNGKey(0)
    if fusion_type == "weight":
      # nn.Parameter(torch.ones(num_views) / num_views)
      self.weight = jnp.ones((num_views,), jnp.float32) / num_views
    if fusion_type == "attention":
      k1, k2, k3, k4 = jax.random.split(key, 4)
      # Stored as (in, out) so the kernel does x @ W (same math as torch Linear).
      self.w1 = jax.random.normal(k1, (in_size, hidden_size), jnp.float32) * 0.1
      self.b1 = jax.random.normal(k2, (1, hidden_size), jnp.float32) * 0.1
      self.w2 = jax.random.normal(k3, (hidden_size, 32), jnp.float32) * 0.1
      self.w3 = jax.random.normal(k4, (32, 1), jnp.float32) * 0.1

  def __call__(self, emb_list, tile_n=None, exact=False):
    if self.fusion_type == "average":
      w = jnp.full((self.num_views,), 1.0 / self.num_views, jnp.float32)
      return weighted_sum_fusion(w, emb_list, tile_n=tile_n)
    elif self.fusion_type == "weight":
      w = jax.nn.softmax(self.weight, axis=0)  # tiny glue, kept in plain JAX
      return weighted_sum_fusion(w, emb_list, tile_n=tile_n)
    elif self.fusion_type == "attention":
      return attention_fusion(emb_list, self.w1, self.b1, self.w2, self.w3,
                              tile_n=tile_n, exact=exact)
    else:
      raise ValueError("Please using a correct fusion type")


# ----------------------------------------------------------------------------
# Pure-JAX reference (for correctness check)
# ----------------------------------------------------------------------------
def _reference(layer, emb_list):
  if layer.fusion_type == "average":
    return sum(emb_list) / len(emb_list)
  if layer.fusion_type == "weight":
    w = jax.nn.softmax(layer.weight, axis=0)
    return sum(w[i] * e for i, e in enumerate(emb_list))
  if layer.fusion_type == "attention":
    with jax.default_matmul_precision("float32"):
      emb_ = jnp.stack(emb_list, axis=1)                       # (N, V, D)
      h = jnp.tanh(emb_ @ layer.w1 + layer.b1[0])
      h = jnp.tanh(h @ layer.w2)
      s = h @ layer.w3                                         # (N, V, 1)
      w = jax.nn.softmax(s, axis=1)
      return (w * emb_).sum(axis=1)
  raise ValueError("unknown fusion type")


if __name__ == "__main__":
  V, D, H = 4, 32, 64
  key = jax.random.PRNGKey(0)
  keys = jax.random.split(key, V + 1)

  ok = True
  # N=20 exercises the multi-step grid + partial last block (no host pad/slice).
  for N in (8, 20):
    emb_list = [jax.random.normal(keys[i], (N, D), jnp.float32) for i in range(V)]
    for ftype in ("attention", "weight", "average"):
      layer = FusionLayerPallas(V, ftype, D, H, key=keys[-1])
      ref = _reference(layer, emb_list)

      out = layer(emb_list)
      jax.block_until_ready(out)
      # Default attention path uses bf16 score-MLP operands (bf16 EUP on v6e+),
      # so a looser tolerance applies there; the f32 path is checked tightly
      # below so real bugs cannot hide behind the bf16 tolerance.
      tol = 5e-2 if ftype == "attention" else 1e-5
      if out.shape != ref.shape:
        ok = False
        print(f"SHAPE MISMATCH N={N} fusion_type={ftype}: {out.shape} vs {ref.shape}")
      elif not bool(jnp.allclose(out, ref, atol=tol, rtol=tol)):
        ok = False
        print(f"MISMATCH N={N} fusion_type={ftype}: "
              f"max err {jnp.max(jnp.abs(out - ref))}")

      if ftype == "attention":
        out_exact = layer(emb_list, exact=True)   # all-f32 score path
        jax.block_until_ready(out_exact)
        if not bool(jnp.allclose(out_exact, ref, atol=2e-3, rtol=2e-3)):
          ok = False
          print(f"MISMATCH (exact f32) N={N}: "
                f"max err {jnp.max(jnp.abs(out_exact - ref))}")

  if ok:
    print("KERNEL_OK")
</pallas_src>

<mosaic_0001>
module attributes {stable_mosaic.version = 11 : i64} {
  func.func @_attention_fusion_kernel(%arg0: i32, %arg1: memref<8x32xf32, #tpu.memory_space<vmem>>, %arg2: memref<8x32xf32, #tpu.memory_space<vmem>>, %arg3: memref<8x32xf32, #tpu.memory_space<vmem>>, %arg4: memref<8x32xf32, #tpu.memory_space<vmem>>, %arg5: memref<32x64xbf16, #tpu.memory_space<vmem>>, %arg6: memref<1x64xf32, #tpu.memory_space<vmem>>, %arg7: memref<64x32xbf16, #tpu.memory_space<vmem>>, %arg8: memref<1x32xf32, #tpu.memory_space<vmem>>, %arg9: memref<8x32xf32, #tpu.memory_space<vmem>>) attributes {dimension_semantics = [#tpu.dimension_semantics<parallel>], iteration_bounds = array<i64: 1>, scalar_prefetch = 0 : i64, scratch_operands = 0 : i64, tpu.core_type = #tpu.core_type<tc>, window_params = [{transform_indices = @transform_0, window_bounds = array<i64: 8, 32>}, {transform_indices = @transform_1, window_bounds = array<i64: 8, 32>}, {transform_indices = @transform_2, window_bounds = array<i64: 8, 32>}, {transform_indices = @transform_3, window_bounds = array<i64: 8, 32>}, {pipeline_mode = #tpu.pipeline_mode<synchronous>, transform_indices = @transform_4, window_bounds = array<i64: 32, 64>}, {pipeline_mode = #tpu.pipeline_mode<synchronous>, transform_indices = @transform_5, window_bounds = array<i64: 1, 64>}, {pipeline_mode = #tpu.pipeline_mode<synchronous>, transform_indices = @transform_6, window_bounds = array<i64: 64, 32>}, {pipeline_mode = #tpu.pipeline_mode<synchronous>, transform_indices = @transform_7, window_bounds = array<i64: 1, 32>}, {transform_indices = @transform_8, window_bounds = array<i64: 8, 32>}]} {
    %c0 = arith.constant 0 : index
    %c0_0 = arith.constant 0 : index
    %0 = vector.load %arg1[%c0, %c0_0] : memref<8x32xf32, #tpu.memory_space<vmem>>, vector<8x32xf32>
    %1 = arith.truncf %0 : vector<8x32xf32> to vector<8x32xbf16>
    %c0_1 = arith.constant 0 : index
    %c0_2 = arith.constant 0 : index
    %2 = vector.load %arg5[%c0_1, %c0_2] : memref<32x64xbf16, #tpu.memory_space<vmem>>, vector<32x64xbf16>
    %cst = arith.constant dense<0.000000e+00> : vector<8x64xf32>
    %3 = tpu.matmul %1, %2, %cst {dimension_numbers = #tpu.dot_dimension_numbers<[1], [0], [0], [1], [0, 0, 1, 1], [], []>} : vector<8x32xbf16>, vector<32x64xbf16>, vector<8x64xf32> -> vector<8x64xf32>
    %c0_3 = arith.constant 0 : index
    %c0_4 = arith.constant 0 : index
    %4 = vector.load %arg6[%c0_3, %c0_4] : memref<1x64xf32, #tpu.memory_space<vmem>>, vector<1x64xf32>
    %5 = vector.broadcast %4 : vector<1x64xf32> to vector<8x64xf32>
    %6 = arith.addf %3, %5 : vector<8x64xf32>
    %7 = arith.truncf %6 : vector<8x64xf32> to vector<8x64xbf16>
    %8 = math.tanh %7 : vector<8x64xbf16>
    %c0_5 = arith.constant 0 : index
    %c0_6 = arith.constant 0 : index
    %9 = vector.load %arg7[%c0_5, %c0_6] : memref<64x32xbf16, #tpu.memory_space<vmem>>, vector<64x32xbf16>
    %cst_7 = arith.constant dense<0.000000e+00> : vector<8x32xf32>
    %10 = tpu.matmul %8, %9, %cst_7 {dimension_numbers = #tpu.dot_dimension_numbers<[1], [0], [0], [1], [0, 0, 1, 1], [], []>} : vector<8x64xbf16>, vector<64x32xbf16>, vector<8x32xf32> -> vector<8x32xf32>
    %11 = arith.truncf %10 : vector<8x32xf32> to vector<8x32xbf16>
    %12 = math.tanh %11 : vector<8x32xbf16>
    %13 = arith.extf %12 : vector<8x32xbf16> to vector<8x32xf32>
    %c0_8 = arith.constant 0 : index
    %c0_9 = arith.constant 0 : index
    %14 = vector.load %arg8[%c0_8, %c0_9] : memref<1x32xf32, #tpu.memory_space<vmem>>, vector<1x32xf32>
    %15 = vector.broadcast %14 : vector<1x32xf32> to vector<8x32xf32>
    %16 = arith.mulf %13, %15 : vector<8x32xf32>
    %cst_10 = arith.constant dense<0.000000e+00> : vector<8xf32>
    %17 = vector.multi_reduction <add>, %16, %cst_10 [1] : vector<8x32xf32> to vector<8xf32>
    %18 = vector.shape_cast %17 : vector<8xf32> to vector<8x1xf32>
    %c0_11 = arith.constant 0 : index
    %c0_12 = arith.constant 0 : index
    %19 = vector.load %arg2[%c0_11, %c0_12] : memref<8x32xf32, #tpu.memory_space<vmem>>, vector<8x32xf32>
    %20 = arith.truncf %19 : vector<8x32xf32> to vector<8x32xbf16>
    %c0_13 = arith.constant 0 : index
    %c0_14 = arith.constant 0 : index
    %21 = vector.load %arg5[%c0_13, %c0_14] : memref<32x64xbf16, #tpu.memory_space<vmem>>, vector<32x64xbf16>
    %cst_15 = arith.constant dense<0.000000e+00> : vector<8x64xf32>
    %22 = tpu.matmul %20, %21, %cst_15 {dimension_numbers = #tpu.dot_dimension_numbers<[1], [0], [0], [1], [0, 0, 1, 1], [], []>} : vector<8x32xbf16>, vector<32x64xbf16>, vector<8x64xf32> -> vector<8x64xf32>
    %c0_16 = arith.constant 0 : index
    %c0_17 = arith.constant 0 : index
    %23 = vector.load %arg6[%c0_16, %c0_17] : memref<1x64xf32, #tpu.memory_space<vmem>>, vector<1x64xf32>
    %24 = vector.broadcast %23 : vector<1x64xf32> to vector<8x64xf32>
    %25 = arith.addf %22, %24 : vector<8x64xf32>
    %26 = arith.truncf %25 : vector<8x64xf32> to vector<8x64xbf16>
    %27 = math.tanh %26 : vector<8x64xbf16>
    %c0_18 = arith.constant 0 : index
    %c0_19 = arith.constant 0 : index
    %28 = vector.load %arg7[%c0_18, %c0_19] : memref<64x32xbf16, #tpu.memory_space<vmem>>, vector<64x32xbf16>
    %cst_20 = arith.constant dense<0.000000e+00> : vector<8x32xf32>
    %29 = tpu.matmul %27, %28, %cst_20 {dimension_numbers = #tpu.dot_dimension_numbers<[1], [0], [0], [1], [0, 0, 1, 1], [], []>} : vector<8x64xbf16>, vector<64x32xbf16>, vector<8x32xf32> -> vector<8x32xf32>
    %30 = arith.truncf %29 : vector<8x32xf32> to vector<8x32xbf16>
    %31 = math.tanh %30 : vector<8x32xbf16>
    %32 = arith.extf %31 : vector<8x32xbf16> to vector<8x32xf32>
    %c0_21 = arith.constant 0 : index
    %c0_22 = arith.constant 0 : index
    %33 = vector.load %arg8[%c0_21, %c0_22] : memref<1x32xf32, #tpu.memory_space<vmem>>, vector<1x32xf32>
    %34 = vector.broadcast %33 : vector<1x32xf32> to vector<8x32xf32>
    %35 = arith.mulf %32, %34 : vector<8x32xf32>
    %cst_23 = arith.constant dense<0.000000e+00> : vector<8xf32>
    %36 = vector.multi_reduction <add>, %35, %cst_23 [1] : vector<8x32xf32> to vector<8xf32>
    %37 = vector.shape_cast %36 : vector<8xf32> to vector<8x1xf32>
    %c0_24 = arith.constant 0 : index
    %c0_25 = arith.constant 0 : index
    %38 = vector.load %arg3[%c0_24, %c0_25] : memref<8x32xf32, #tpu.memory_space<vmem>>, vector<8x32xf32>
    %39 = arith.truncf %38 : vector<8x32xf32> to vector<8x32xbf16>
    %c0_26 = arith.constant 0 : index
    %c0_27 = arith.constant 0 : index
    %40 = vector.load %arg5[%c0_26, %c0_27] : memref<32x64xbf16, #tpu.memory_space<vmem>>, vector<32x64xbf16>
    %cst_28 = arith.constant dense<0.000000e+00> : vector<8x64xf32>
    %41 = tpu.matmul %39, %40, %cst_28 {dimension_numbers = #tpu.dot_dimension_numbers<[1], [0], [0], [1], [0, 0, 1, 1], [], []>} : vector<8x32xbf16>, vector<32x64xbf16>, vector<8x64xf32> -> vector<8x64xf32>
    %c0_29 = arith.constant 0 : index
    %c0_30 = arith.constant 0 : index
    %42 = vector.load %arg6[%c0_29, %c0_30] : memref<1x64xf32, #tpu.memory_space<vmem>>, vector<1x64xf32>
    %43 = vector.broadcast %42 : vector<1x64xf32> to vector<8x64xf32>
    %44 = arith.addf %41, %43 : vector<8x64xf32>
    %45 = arith.truncf %44 : vector<8x64xf32> to vector<8x64xbf16>
    %46 = math.tanh %45 : vector<8x64xbf16>
    %c0_31 = arith.constant 0 : index
    %c0_32 = arith.constant 0 : index
    %47 = vector.load %arg7[%c0_31, %c0_32] : memref<64x32xbf16, #tpu.memory_space<vmem>>, vector<64x32xbf16>
    %cst_33 = arith.constant dense<0.000000e+00> : vector<8x32xf32>
    %48 = tpu.matmul %46, %47, %cst_33 {dimension_numbers = #tpu.dot_dimension_numbers<[1], [0], [0], [1], [0, 0, 1, 1], [], []>} : vector<8x64xbf16>, vector<64x32xbf16>, vector<8x32xf32> -> vector<8x32xf32>
    %49 = arith.truncf %48 : vector<8x32xf32> to vector<8x32xbf16>
    %50 = math.tanh %49 : vector<8x32xbf16>
    %51 = arith.extf %50 : vector<8x32xbf16> to vector<8x32xf32>
    %c0_34 = arith.constant 0 : index
    %c0_35 = arith.constant 0 : index
    %52 = vector.load %arg8[%c0_34, %c0_35] : memref<1x32xf32, #tpu.memory_space<vmem>>, vector<1x32xf32>
    %53 = vector.broadcast %52 : vector<1x32xf32> to vector<8x32xf32>
    %54 = arith.mulf %51, %53 : vector<8x32xf32>
    %cst_36 = arith.constant dense<0.000000e+00> : vector<8xf32>
    %55 = vector.multi_reduction <add>, %54, %cst_36 [1] : vector<8x32xf32> to vector<8xf32>
    %56 = vector.shape_cast %55 : vector<8xf32> to vector<8x1xf32>
    %c0_37 = arith.constant 0 : index
    %c0_38 = arith.constant 0 : index
    %57 = vector.load %arg4[%c0_37, %c0_38] : memref<8x32xf32, #tpu.memory_space<vmem>>, vector<8x32xf32>
    %58 = arith.truncf %57 : vector<8x32xf32> to vector<8x32xbf16>
    %c0_39 = arith.constant 0 : index
    %c0_40 = arith.constant 0 : index
    %59 = vector.load %arg5[%c0_39, %c0_40] : memref<32x64xbf16, #tpu.memory_space<vmem>>, vector<32x64xbf16>
    %cst_41 = arith.constant dense<0.000000e+00> : vector<8x64xf32>
    %60 = tpu.matmul %58, %59, %cst_41 {dimension_numbers = #tpu.dot_dimension_numbers<[1], [0], [0], [1], [0, 0, 1, 1], [], []>} : vector<8x32xbf16>, vector<32x64xbf16>, vector<8x64xf32> -> vector<8x64xf32>
    %c0_42 = arith.constant 0 : index
    %c0_43 = arith.constant 0 : index
    %61 = vector.load %arg6[%c0_42, %c0_43] : memref<1x64xf32, #tpu.memory_space<vmem>>, vector<1x64xf32>
    %62 = vector.broadcast %61 : vector<1x64xf32> to vector<8x64xf32>
    %63 = arith.addf %60, %62 : vector<8x64xf32>
    %64 = arith.truncf %63 : vector<8x64xf32> to vector<8x64xbf16>
    %65 = math.tanh %64 : vector<8x64xbf16>
    %c0_44 = arith.constant 0 : index
    %c0_45 = arith.constant 0 : index
    %66 = vector.load %arg7[%c0_44, %c0_45] : memref<64x32xbf16, #tpu.memory_space<vmem>>, vector<64x32xbf16>
    %cst_46 = arith.constant dense<0.000000e+00> : vector<8x32xf32>
    %67 = tpu.matmul %65, %66, %cst_46 {dimension_numbers = #tpu.dot_dimension_numbers<[1], [0], [0], [1], [0, 0, 1, 1], [], []>} : vector<8x64xbf16>, vector<64x32xbf16>, vector<8x32xf32> -> vector<8x32xf32>
    %68 = arith.truncf %67 : vector<8x32xf32> to vector<8x32xbf16>
    %69 = math.tanh %68 : vector<8x32xbf16>
    %70 = arith.extf %69 : vector<8x32xbf16> to vector<8x32xf32>
    %c0_47 = arith.constant 0 : index
    %c0_48 = arith.constant 0 : index
    %71 = vector.load %arg8[%c0_47, %c0_48] : memref<1x32xf32, #tpu.memory_space<vmem>>, vector<1x32xf32>
    %72 = vector.broadcast %71 : vector<1x32xf32> to vector<8x32xf32>
    %73 = arith.mulf %70, %72 : vector<8x32xf32>
    %cst_49 = arith.constant dense<0.000000e+00> : vector<8xf32>
    %74 = vector.multi_reduction <add>, %73, %cst_49 [1] : vector<8x32xf32> to vector<8xf32>
    %75 = vector.shape_cast %74 : vector<8xf32> to vector<8x1xf32>
    %76 = arith.maximumf %18, %37 : vector<8x1xf32>
    %77 = arith.maximumf %76, %56 : vector<8x1xf32>
    %78 = arith.maximumf %77, %75 : vector<8x1xf32>
    %79 = tpu.iota {dimensions = array<i32: 1>} : vector<8x4xi32>
    %80 = arith.subf %18, %78 : vector<8x1xf32>
    %81 = vector.shape_cast %80 : vector<8x1xf32> to vector<8x1xf32>
    %82 = vector.broadcast %81 : vector<8x1xf32> to vector<8x4xf32>
    %c1_i32 = arith.constant 1 : i32
    %83 = vector.broadcast %c1_i32 : i32 to vector<8x4xi32>
    %84 = arith.cmpi eq, %79, %83 : vector<8x4xi32>
    %85 = arith.subf %37, %78 : vector<8x1xf32>
    %86 = vector.shape_cast %85 : vector<8x1xf32> to vector<8x1xf32>
    %87 = vector.broadcast %86 : vector<8x1xf32> to vector<8x4xf32>
    %88 = arith.select %84, %87, %82 : vector<8x4xi1>, vector<8x4xf32>
    %c2_i32 = arith.constant 2 : i32
    %89 = vector.broadcast %c2_i32 : i32 to vector<8x4xi32>
    %90 = arith.cmpi eq, %79, %89 : vector<8x4xi32>
    %91 = arith.subf %56, %78 : vector<8x1xf32>
    %92 = vector.shape_cast %91 : vector<8x1xf32> to vector<8x1xf32>
    %93 = vector.broadcast %92 : vector<8x1xf32> to vector<8x4xf32>
    %94 = arith.select %90, %93, %88 : vector<8x4xi1>, vector<8x4xf32>
    %c3_i32 = arith.constant 3 : i32
    %95 = vector.broadcast %c3_i32 : i32 to vector<8x4xi32>
    %96 = arith.cmpi eq, %79, %95 : vector<8x4xi32>
    %97 = arith.subf %75, %78 : vector<8x1xf32>
    %98 = vector.shape_cast %97 : vector<8x1xf32> to vector<8x1xf32>
    %99 = vector.broadcast %98 : vector<8x1xf32> to vector<8x4xf32>
    %100 = arith.select %96, %99, %94 : vector<8x4xi1>, vector<8x4xf32>
    %101 = arith.truncf %100 : vector<8x4xf32> to vector<8x4xbf16>
    %102 = math.exp %101 : vector<8x4xbf16>
    %103 = arith.extf %102 : vector<8x4xbf16> to vector<8x4xf32>
    %104 = vector.extract_strided_slice %103 {offsets = [0, 0], sizes = [8, 1], strides = [1, 1]} : vector<8x4xf32> to vector<8x1xf32>
    %105 = vector.extract_strided_slice %103 {offsets = [0, 1], sizes = [8, 1], strides = [1, 1]} : vector<8x4xf32> to vector<8x1xf32>
    %106 = vector.extract_strided_slice %103 {offsets = [0, 2], sizes = [8, 1], strides = [1, 1]} : vector<8x4xf32> to vector<8x1xf32>
    %107 = vector.extract_strided_slice %103 {offsets = [0, 3], sizes = [8, 1], strides = [1, 1]} : vector<8x4xf32> to vector<8x1xf32>
    %108 = arith.addf %104, %105 : vector<8x1xf32>
    %109 = arith.addf %108, %106 : vector<8x1xf32>
    %110 = arith.addf %109, %107 : vector<8x1xf32>
    %cst_50 = arith.constant 1.000000e+00 : f32
    %111 = vector.broadcast %cst_50 : f32 to vector<8x1xf32>
    %112 = arith.divf %111, %110 : vector<8x1xf32>
    %113 = arith.mulf %104, %112 : vector<8x1xf32>
    %c0_51 = arith.constant 0 : index
    %c0_52 = arith.constant 0 : index
    %114 = vector.load %arg1[%c0_51, %c0_52] : memref<8x32xf32, #tpu.memory_space<vmem>>, vector<8x32xf32>
    %115 = vector.broadcast %113 : vector<8x1xf32> to vector<8x32xf32>
    %116 = arith.mulf %115, %114 : vector<8x32xf32>
    %117 = arith.mulf %105, %112 : vector<8x1xf32>
    %c0_53 = arith.constant 0 : index
    %c0_54 = arith.constant 0 : index
    %118 = vector.load %arg2[%c0_53, %c0_54] : memref<8x32xf32, #tpu.memory_space<vmem>>, vector<8x32xf32>
    %119 = vector.broadcast %117 : vector<8x1xf32> to vector<8x32xf32>
    %120 = arith.mulf %119, %118 : vector<8x32xf32>
    %121 = arith.addf %116, %120 : vector<8x32xf32>
    %122 = arith.mulf %106, %112 : vector<8x1xf32>
    %c0_55 = arith.constant 0 : index
    %c0_56 = arith.constant 0 : index
    %123 = vector.load %arg3[%c0_55, %c0_56] : memref<8x32xf32, #tpu.memory_space<vmem>>, vector<8x32xf32>
    %124 = vector.broadcast %122 : vector<8x1xf32> to vector<8x32xf32>
    %125 = arith.mulf %124, %123 : vector<8x32xf32>
    %126 = arith.addf %121, %125 : vector<8x32xf32>
    %127 = arith.mulf %107, %112 : vector<8x1xf32>
    %c0_57 = arith.constant 0 : index
    %c0_58 = arith.constant 0 : index
    %128 = vector.load %arg4[%c0_57, %c0_58] : memref<8x32xf32, #tpu.memory_space<vmem>>, vector<8x32xf32>
    %129 = vector.broadcast %127 : vector<8x1xf32> to vector<8x32xf32>
    %130 = arith.mulf %129, %128 : vector<8x32xf32>
    %131 = arith.addf %126, %130 : vector<8x32xf32>
    %c0_59 = arith.constant 0 : index
    %c0_60 = arith.constant 0 : index
    %132 = vector.load %arg9[%c0_59, %c0_60] : memref<8x32xf32, #tpu.memory_space<vmem>>, vector<8x32xf32>
    tpu.vector_store %arg9[%c0_59, %c0_60], %131 {strides = array<i32>} : memref<8x32xf32, #tpu.memory_space<vmem>>, vector<8x32xf32>,
    return
  }
  func.func @transform_0(%arg0: i32) -> (i32, i32) {
    %c0_i32 = arith.constant 0 : i32
    %c0_i32_0 = arith.constant 0 : i32
    return %arg0, %c0_i32 : i32, i32
  }
  func.func @transform_1(%arg0: i32) -> (i32, i32) {
    %c0_i32 = arith.constant 0 : i32
    %c0_i32_0 = arith.constant 0 : i32
    return %arg0, %c0_i32 : i32, i32
  }
  func.func @transform_2(%arg0: i32) -> (i32, i32) {
    %c0_i32 = arith.constant 0 : i32
    %c0_i32_0 = arith.constant 0 : i32
    return %arg0, %c0_i32 : i32, i32
  }
  func.func @transform_3(%arg0: i32) -> (i32, i32) {
    %c0_i32 = arith.constant 0 : i32
    %c0_i32_0 = arith.constant 0 : i32
    return %arg0, %c0_i32 : i32, i32
  }
  func.func @transform_4(%arg0: i32) -> (i32, i32) {
    %c0_i32 = arith.constant 0 : i32
    %c0_i32_0 = arith.constant 0 : i32
    %c0_i32_1 = arith.constant 0 : i32
    return %c0_i32, %c0_i32_0 : i32, i32
  }
  func.func @transform_5(%arg0: i32) -> (i32, i32) {
    %c0_i32 = arith.constant 0 : i32
    %c0_i32_0 = arith.constant 0 : i32
    %c0_i32_1 = arith.constant 0 : i32
    return %c0_i32, %c0_i32_0 : i32, i32
  }
  func.func @transform_6(%arg0: i32) -> (i32, i32) {
    %c0_i32 = arith.constant 0 : i32
    %c0_i32_0 = arith.constant 0 : i32
    %c0_i32_1 = arith.constant 0 : i32
    return %c0_i32, %c0_i32_0 : i32, i32
  }
  func.func @transform_7(%arg0: i32) -> (i32, i32) {
    %c0_i32 = arith.constant 0 : i32
    %c0_i32_0 = arith.constant 0 : i32
    %c0_i32_1 = arith.constant 0 : i32
    return %c0_i32, %c0_i32_0 : i32, i32
  }
  func.func @transform_8(%arg0: i32) -> (i32, i32) {
    %c0_i32 = arith.constant 0 : i32
    %c0_i32_0 = arith.constant 0 : i32
    return %arg0, %c0_i32 : i32, i32
  }
}

</mosaic_0001>

<bundles_post_ra>
// kernel: tpu_custom_call.1
= control target key start
LH: loop header
LB: loop body
LE: loop exit
PB: predicated region body
PF: predicated region fallthrough
CT: control target
= control target key end

     0   :  { %13 = vsyncpa [#allocation3], 0  ;;  %s1335_s0 = inlined_call_operand.hbm [shape: f32[8,32], index: 0, kind: input, shape index: {}]   ;;  %s1336_s1 = inlined_call_operand.hbm [shape: f32[8,32], index: 1, kind: input, shape index: {}]   ;;  %s1337_s2 = inlined_call_operand.hbm [shape: f32[8,32], index: 2, kind: input, shape index: {}]   ;;  %s1338_s3 = inlined_call_operand.hbm [shape: f32[8,32], index: 3, kind: input, shape index: {}]   ;;  %s1339_s4 = inlined_call_operand.hbm [shape: bf16[32,64], index: 4, kind: input, shape index: {}]   ;;  %s1340_s5 = inlined_call_operand.hbm [shape: f32[1,64], index: 5, kind: input, shape index: {}]   ;;  %s1341_s6 = inlined_call_operand.hbm [shape: bf16[64,32], index: 6, kind: input, shape index: {}]   ;;  %s1342_s7 = inlined_call_operand.hbm [shape: f32[1,32], index: 7, kind: input, shape index: {}]   ;;  %s1343_s8 = inlined_call_operand.hbm [shape: f32[8,32], index: 8, kind: output, shape index: {}]  }
   0x1   :  { %14 = vsyncpa [#allocation6], 0 }
   0x2   :  { %15 = vsyncpa [#allocation9], 0 }
   0x3   :  { %16 = vsyncpa [#allocation12], 0 }
   0x4   :  { %17 = vsyncpa [#allocation15], 0 }
   0x5   :  { %18 = vsyncpa [#allocation4], 0  ;;  %s1067_s27 = smov [#allocation5]   ;;  %s1068_s29 = smov [#allocation8]  }
   0x6   :  { %s35_s28 = sshll.u32 %s1067_s27, 4  ;;  %s55_s30 = sshll.u32 %s1068_s29, 4  ;;  %s36_s28 = int_to_ptr.vmem [resolvable:$true] %s35_s28  ;;  %s56_s30 = int_to_ptr.vmem [resolvable:$true] %s55_s30 }
   0x7   :  { %s857_s11 = scalar_lea.hbm %s1336_s1, 128 }
   0x8   :  { %p858_p0 = scmp.ne.s32.totalorder %s1336_s1, %s857_s11  ;;  %p861_p1 = scmp.lt.u32.totalorder %s857_s11, %s1336_s1 }
   0xa   :  { %p863_p2 = pnand %p861_p1, %p858_p0 }
   0xc   :  { %866 = shalt.err (!%p863_p2)
}
   0xd   :  { %s867_s16 = scalar_lea.vmem %s36_s28, 128  ;;  %p872_p4 = scmp.lt.s32.totalorder %s36_s28, %s36_s28 }
   0xe   :  { %p868_p3 = scmp.ne.s32.totalorder %s36_s28, %s867_s16  ;;  %p873_p5 = scmp.lt.s32.totalorder %s867_s16, %s867_s16 }
  0x10   :  { %p874_p6 = por %p873_p5, %p872_p4 }
  0x12   :  { %p875_p7 = pnand %p874_p6, %p868_p3 }
  0x14   :  { %878 = shalt.err (!%p875_p7)
}
  0x15   :  { %38 = dma.hbm_to_vmem [thread:$0]  %s1336_s1, 128, %s36_s28, [#allocation6]  }
  0x16   :  { %s879_s21 = scalar_lea.hbm %s1338_s3, 128 }
  0x17   :  { %p880_p8 = scmp.ne.s32.totalorder %s1338_s3, %s879_s21  ;;  %p883_p9 = scmp.lt.u32.totalorder %s879_s21, %s1338_s3 }
  0x19   :  { %p885_p10 = pnand %p883_p9, %p880_p8 }
  0x1b   :  { %888 = shalt.err (!%p885_p10)
}
  0x1c   :  { %s889_s26 = scalar_lea.vmem %s56_s30, 128  ;;  %p894_p12 = scmp.lt.s32.totalorder %s56_s30, %s56_s30 }
  0x1d   :  { %p890_p11 = scmp.ne.s32.totalorder %s56_s30, %s889_s26  ;;  %p895_p13 = scmp.lt.s32.totalorder %s889_s26, %s889_s26 }
  0x1f   :  { %p896_p0 = por %p895_p13, %p894_p12 }
  0x21   :  { %p897_p1 = pnand %p896_p0, %p890_p11 }
  0x23   :  { %900 = shalt.err (!%p897_p1)
}
  0x24   :  { %58 = dma.hbm_to_vmem [thread:$0]  %s1338_s3, 128, %s56_s30, [#allocation9]  }
  0x25   :  { %s1069_s28 = smov [#allocation11]   ;;  %s1070_s9 = smov [#allocation2]  }
  0x26   :  { %s77_s29 = sshll.u32 %s1069_s28, 4  ;;  %s25_s10 = sshll.u32 %s1070_s9, 4  ;;  %s78_s29 = int_to_ptr.vmem [resolvable:$true] %s77_s29  ;;  %s26_s10 = int_to_ptr.vmem [resolvable:$true] %s25_s10 }
  0x27   :  { %s901_s13 = scalar_lea.hbm %s1340_s5, 16 }
  0x28   :  { %p902_p2 = scmp.ne.s32.totalorder %s1340_s5, %s901_s13  ;;  %p905_p3 = scmp.lt.u32.totalorder %s901_s13, %s1340_s5 }
  0x2a   :  { %p907_p4 = pnand %p905_p3, %p902_p2 }
  0x2c   :  { %910 = shalt.err (!%p907_p4)
}
  0x2d   :  { %s911_s3 = scalar_lea.vmem %s78_s29, 16  ;;  %s915_s30 = scalar_lea.vmem %s78_s29, 32 }
  0x2e   :  { %p912_p5 = scmp.ne.s32.totalorder %s78_s29, %s911_s3  ;;  %p916_p6 = scmp.lt.s32.totalorder %s78_s29, %s78_s29 }
  0x2f   :  { %p917_p7 = scmp.lt.s32.totalorder %s915_s30, %s911_s3 }
  0x31   :  { %p918_p8 = por %p917_p7, %p916_p6 }
  0x33   :  { %p919_p9 = pnand %p918_p8, %p912_p5 }
  0x35   :  { %922 = shalt.err (!%p919_p9)
}
  0x36   :  { %80 = dma.hbm_to_vmem [thread:$0]  %s1340_s5, 16, %s78_s29, [#allocation12]  }
  0x37   :  { %s923_s22 = scalar_lea.hbm %s1335_s0, 128 }
  0x38   :  { %p924_p10 = scmp.ne.s32.totalorder %s1335_s0, %s923_s22  ;;  %p927_p11 = scmp.lt.u32.totalorder %s923_s22, %s1335_s0 }
  0x3a   :  { %p929_p12 = pnand %p927_p11, %p924_p10 }
  0x3c   :  { %932 = shalt.err (!%p929_p12)
}
  0x3d   :  { %s933_s1 = scalar_lea.vmem %s26_s10, 128  ;;  %p938_p0 = scmp.lt.s32.totalorder %s26_s10, %s26_s10 }
  0x3e   :  { %p934_p13 = scmp.ne.s32.totalorder %s26_s10, %s933_s1  ;;  %p939_p1 = scmp.lt.s32.totalorder %s933_s1, %s933_s1 }
  0x40   :  { %p940_p2 = por %p939_p1, %p938_p0 }
  0x42   :  { %p941_p3 = pnand %p940_p2, %p934_p13 }
  0x44   :  { %944 = shalt.err (!%p941_p3)
}
  0x45   :  { %28 = dma.hbm_to_vmem [thread:$0]  %s1335_s0, 128, %s26_s10, [#allocation3]  }
  0x46   :  { %s1071_s28 = smov [#allocation7]   ;;  %s1072_s9 = smov [#allocation10]  }
  0x47   :  { %s45_s29 = sshll.u32 %s1071_s28, 4  ;;  %s64_s11 = sshll.u32 %s1072_s9, 4  ;;  %s46_s29 = int_to_ptr.vmem [resolvable:$true] %s45_s29  ;;  %s1183_s11 = int_to_ptr.vmem [resolvable:$true] %s64_s11 }
  0x48   :  { %s945_s14 = scalar_lea.hbm %s1337_s2, 128 }
  0x49   :  { %p946_p4 = scmp.ne.s32.totalorder %s1337_s2, %s945_s14  ;;  %p949_p5 = scmp.lt.u32.totalorder %s945_s14, %s1337_s2 }
  0x4b   :  { %p951_p6 = pnand %p949_p5, %p946_p4 }
  0x4d   :  { %954 = shalt.err (!%p951_p6)
}
  0x4e   :  { %s955_s0 = scalar_lea.vmem %s46_s29, 128  ;;  %p960_p8 = scmp.lt.s32.totalorder %s46_s29, %s46_s29 }
  0x4f   :  { %p956_p7 = scmp.ne.s32.totalorder %s46_s29, %s955_s0  ;;  %p961_p9 = scmp.lt.s32.totalorder %s955_s0, %s955_s0 }
  0x51   :  { %p962_p10 = por %p961_p9, %p960_p8 }
  0x53   :  { %p963_p11 = pnand %p962_p10, %p956_p7 }
  0x55   :  { %966 = shalt.err (!%p963_p11)
}
  0x56   :  { %48 = dma.hbm_to_vmem [thread:$0]  %s1337_s2, 128, %s46_s29, [#allocation6]  }
  0x57   :  { %s967_s20 = scalar_lea.hbm %s1339_s4, 256 }
  0x58   :  { %p968_p12 = scmp.ne.s32.totalorder %s1339_s4, %s967_s20  ;;  %p971_p13 = scmp.lt.u32.totalorder %s967_s20, %s1339_s4 }
  0x5a   :  { %p973_p0 = pnand %p971_p13, %p968_p12 }
  0x5c   :  { %976 = shalt.err (!%p973_p0)
}
  0x5d   :  { %s977_s25 = scalar_lea.vmem %s1183_s11, 256  ;;  %p982_p2 = scmp.lt.s32.totalorder %s1183_s11, %s1183_s11 }
  0x5e   :  { %p978_p1 = scmp.ne.s32.totalorder %s1183_s11, %s977_s25  ;;  %p983_p3 = scmp.lt.s32.totalorder %s977_s25, %s977_s25 }
  0x60   :  { %p984_p4 = por %p983_p3, %p982_p2 }
  0x62   :  { %p985_p5 = pnand %p984_p4, %p978_p1 }
  0x64   :  { %988 = shalt.err (!%p985_p5)
}
  0x65   :  { %s1073_s2 = smov 64   ;;  %s1074_s26 = smov 4  }
  0x66   :  { %70 = dma.hbm_to_vmem [thread:$0]  %s1339_s4, 256, %s1183_s11, [#allocation9], %s1073_s2, %s1073_s2, %s1074_s26  }
  0x67   :  { %s1075_s27 = smov [#allocation13]   ;;  %s1076_s29 = smov [#allocation14]  }
  0x68   :  { %s86_s28 = sshll.u32 %s1075_s27, 4  ;;  %s99_s9 = sshll.u32 %s1076_s29, 4  ;;  %s87_s28 = int_to_ptr.vmem [resolvable:$true] %s86_s28  ;;  %s100_s9 = int_to_ptr.vmem [resolvable:$true] %s99_s9 }
  0x69   :  { %s989_s14 = scalar_lea.hbm %s1341_s6, 512 }
  0x6a   :  { %p990_p6 = scmp.ne.s32.totalorder %s1341_s6, %s989_s14  ;;  %p993_p7 = scmp.lt.u32.totalorder %s989_s14, %s1341_s6 }
  0x6c   :  { %p995_p8 = pnand %p993_p7, %p990_p6 }
  0x6e   :  { %998 = shalt.err (!%p995_p8)
}
  0x6f   :  { %s999_s4 = scalar_lea.vmem %s87_s28, 512  ;;  %p1004_p10 = scmp.lt.s32.totalorder %s87_s28, %s87_s28 }
  0x70   :  { %p1000_p9 = scmp.ne.s32.totalorder %s87_s28, %s999_s4  ;;  %p1005_p11 = scmp.lt.s32.totalorder %s999_s4, %s999_s4 }
  0x72   :  { %p1006_p12 = por %p1005_p11, %p1004_p10 }
  0x74   :  { %p1007_p13 = pnand %p1006_p12, %p1000_p9 }
  0x76   :  { %1010 = shalt.err (!%p1007_p13)
}
  0x77   :  { %92 = dma.hbm_to_vmem [thread:$0]  %s1341_s6, 512, %s87_s28, [#allocation12], %s1073_s2, %s1073_s2, %s1074_s26  }
  0x78   :  { %s1011_s18 = scalar_lea.hbm %s1342_s7, 16 }
  0x79   :  { %p1012_p0 = scmp.ne.s32.totalorder %s1342_s7, %s1011_s18  ;;  %p1015_p1 = scmp.lt.u32.totalorder %s1011_s18, %s1342_s7 }
  0x7b   :  { %p1017_p2 = pnand %p1015_p1, %p1012_p0 }
  0x7d   :  { %1020 = shalt.err (!%p1017_p2)
}
  0x7e   :  { %s1021_s23 = scalar_lea.vmem %s100_s9, 16  ;;  %s1025_s24 = scalar_lea.vmem %s100_s9, 32 }
  0x7f   :  { %p1022_p3 = scmp.ne.s32.totalorder %s100_s9, %s1021_s23  ;;  %p1026_p4 = scmp.lt.s32.totalorder %s100_s9, %s100_s9 }
  0x80   :  { %p1027_p5 = scmp.lt.s32.totalorder %s1025_s24, %s1021_s23 }
  0x82   :  { %p1028_p6 = por %p1027_p5, %p1026_p4 }
  0x84   :  { %p1029_p7 = pnand %p1028_p6, %p1022_p3 }
  0x86   :  { %1032 = shalt.err (!%p1029_p7)
}
  0x87   :  { %102 = dma.hbm_to_vmem [thread:$0]  %s1342_s7, 16, %s100_s9, [#allocation15]  }
  0x88   :  { %1055 = dma.done.wait [#allocation3], 128  }
  0x89   :  { %1056 = vsyncadd [#allocation3], 4294967168 }
  0x8a   :  { %1057 = dma.done.wait [#allocation6], 256  }
  0x8b   :  { %1058 = vsyncadd [#allocation6], 4294967040 }
  0x8c   :  { %1059 = dma.done.wait [#allocation9], 384  }
  0x8d   :  { %1060 = vsyncadd [#allocation9], 4294966912 }
  0x8e   :  { %1061 = dma.done.wait [#allocation12], 528  }
  0x8f   :  { %1062 = vsyncadd [#allocation12], 4294966768 }
  0x90   :  { %1063 = dma.done.wait [#allocation15], 16  }
  0x91   :  { %1064 = vsyncadd [#allocation15], 4294967280  ;;  %v1077_v0 = vmov 0.0   ;;  %vm1078_vm0 = vmmov 0   ;;  %v831_v1 = vld [vmem:[#allocation10] sm:$0xff]   ;;  %v1244_v2 = vld [vmem:[#allocation10 + $0x8] sm:$0xff]  }
  0x92   :  { %724 = vmatprep.subr.bf16.mxu1 %v1077_v0  ;;  %744 = vmatprep.subr.bf16.mxu0 %v1077_v0  ;;  %v1246_v3 = vld [vmem:[#allocation2] sm:$0xff]  ;;  %v1248_v4 = vld [vmem:[#allocation5] sm:$0xff]  ;;  %vm153_vm1 = vcmask 261120   ;;  %v833_v7 = vld [vmem:[#allocation13] sm:$0xff]   ;;  %vm231_vm2 = vcmask 523264   ;;  %s1079_s7 = smov 126  }
  0x93   :  { %728 = vmatprep.mubr.msk.bf16.mxu1 %vm1078_vm0, %v1077_v0  ;;  %748 = vmatprep.mubr.msk.bf16.mxu0 %vm1078_vm0, %v1077_v0  ;;  %v129_v5 = vpack.c.bf16 %v1246_v3, %v1246_v3  ;;  %v290_v6 = vpack.c.bf16 %v1248_v4, %v1248_v4  ;;  %v834_v8 = vld [vmem:[#allocation13 + $0x8] sm:$0xff]   ;;  %v835_v9 = vld [vmem:[#allocation13 + $0x10] sm:$0xff]   ;;  %v836_v10 = vld [vmem:[#allocation13 + $0x18] sm:$0xff]   ;;  %s1080_s2 = smov 127   ;;  %s1081_s26 = smov 125  }
  0x94   :  { %725 = vmatpush3.bf16.msra.mxu1 %v831_v1  ;;  %745 = vmatpush3.bf16.msra.mxu0 %v831_v1  ;;  %v1274_v11 = vld [vmem:[#allocation11] ss:$0 sm:$0xff]  ;;  %v1283_v27 = vld [vmem:[#allocation8] sm:$0xff]  ;;  %v685_v53 = vld [vmem:[#allocation14] ss:$0 sm:$0xff]  ;;  %s1084_s1 = smov 2  }
  0x95   :  { %726 = vmatprep.subr.bf16.mxu1 %v1077_v0  ;;  %746 = vmatprep.subr.bf16.mxu0 %v1077_v0  ;;  %v1280_v26 = vld [vmem:[#allocation7] sm:$0xff]  ;;  %v484_v29 = vpack.c.bf16 %v1283_v27, %v1283_v27  ;;  %s1085_s5 = smov 1   ;;  %s1086_s27 = smov 3  }
  0x96   :  { %v387_v28 = vpack.c.bf16 %v1280_v26, %v1280_v26  ;;  %s1089_s28 = smov [#allocation16]  }
  0x97   :  { %s663_s29 = sshll.u32 %s1089_s28, 4  ;;  %s664_s29 = int_to_ptr.vmem [resolvable:$true] %s663_s29 }
  0x98   :  { %727 = vmatpush3.bf16.msra.mxu1 %v1244_v2  ;;  %747 = vmatpush3.bf16.msra.mxu0 %v1244_v2  ;;  %s1033_s9 = scalar_lea.vmem %s664_s29, 128  ;;  %p1038_p9 = scmp.lt.s32.totalorder %s664_s29, %s664_s29 }
  0x99   :  { %732 = vmatprep.subr.bf16.mxu1 %v1077_v0  ;;  %752 = vmatprep.subr.bf16.mxu0 %v1077_v0  ;;  %p1034_p8 = scmp.ne.s32.totalorder %s664_s29, %s1033_s9  ;;  %p1039_p10 = scmp.lt.s32.totalorder %s1033_s9, %s1033_s9 }
  0x9b   :  { %729 = vmatmul.mubr.msk.bf16.vlgmr.msra.gmra.mrb[0].mxu1 %vm153_vm1, %v129_v5  ;;  %749 = vmatmul.mubr.msk.bf16.vlgmr.msra.gmra.mrb[0].mxu0 %vm153_vm1, %v290_v6  ;;  %p1040_p11 = por %p1039_p10, %p1038_p9 }
  0x9c   :  { %740 = vmatprep.mubr.msk.bf16.mxu1 %vm1078_vm0, %v1077_v0  ;;  %760 = vmatprep.mubr.msk.bf16.mxu0 %vm1078_vm0, %v1077_v0 }
  0x9d   :  { %733 = vmatpush3.bf16.msra.mxu1 %v833_v7  ;;  %753 = vmatpush3.bf16.msra.mxu0 %v833_v7  ;;  %p1041_p12 = pnand %p1040_p11, %p1034_p8 }
  0x9e   :  { %734 = vmatprep.subr.bf16.mxu1 %v1077_v0  ;;  %754 = vmatprep.subr.bf16.mxu0 %v1077_v0 }
  0xa1   :  { %735 = vmatpush3.bf16.msra.mxu1 %v834_v8  ;;  %755 = vmatpush3.bf16.msra.mxu0 %v834_v8 }
  0xa2   :  { %736 = vmatprep.subr.bf16.mxu1 %v1077_v0  ;;  %756 = vmatprep.subr.bf16.mxu0 %v1077_v0 }
  0xa5   :  { %737 = vmatpush3.bf16.msra.mxu1 %v835_v9  ;;  %757 = vmatpush3.bf16.msra.mxu0 %v835_v9 }
  0xa6   :  { %738 = vmatprep.subr.bf16.mxu1 %v1077_v0  ;;  %758 = vmatprep.subr.bf16.mxu0 %v1077_v0 }
  0xa9   :  { %739 = vmatpush3.bf16.msra.mxu1 %v836_v10  ;;  %759 = vmatpush3.bf16.msra.mxu0 %v836_v10 }
  0xaa   :  { %764 = vmatprep.subr.bf16.mxu1 %v1077_v0  ;;  %784 = vmatprep.subr.bf16.mxu0 %v1077_v0 }
 0x16e   :  { %v191_v12 = vpop.f32.mrb[0].mxu1  ;;  %v328_v13 = vpop.f32.mrb[0].mxu0 }
 0x16f   :  { %v192_v14 = vadd.f32 %v1274_v11, %v191_v12  ;;  %v730_v15 = vpop.f32.mrb[1].mxu1  ;;  %v329_v16 = vadd.f32 %v1274_v11, %v328_v13  ;;  %v750_v17 = vpop.f32.mrb[1].mxu0 }
 0x170   :  { %v194_v18 = vpop.f32.mrb[2].mxu1  ;;  %v331_v19 = vpop.f32.mrb[2].mxu0 }
 0x171   :  { %v197_v20 = vpack.c.bf16 %v192_v14, %v192_v14  ;;  %v334_v21 = vpack.c.bf16 %v329_v16, %v329_v16  ;;  %v731_v22 = vpop.f32.mrb[3].mxu1  ;;  %v751_v23 = vpop.f32.mrb[3].mxu0 }
 0x173   :  { %837 = vtanh.bf16 %v197_v20 }
 0x174   :  { %839 = vtanh.bf16 %v334_v21  ;;  %v583_v21 = vlaneseq }
 0x17e   :  { %v838_v24 = vpop.eup %837 }
 0x17f   :  { %v840_v25 = vpop.eup %839  ;;  %741 = vmatmul.mubr.msk.bf16.vlgmr.msra.gmra.mrb[4].mxu1 %vm231_vm2, %v838_v24  ;;  %v584_v24 = vand.u32 127, %v583_v21 }
 0x180   :  { %765 = vmatpush3.bf16.msra.mxu1 %v831_v1  ;;  %761 = vmatmul.mubr.msk.bf16.vlgmr.msra.gmra.mrb[4].mxu0 %vm231_vm2, %v840_v25 }
 0x181   :  { %785 = vmatpush3.bf16.msra.mxu0 %v831_v1  ;;  %766 = vmatprep.subr.bf16.mxu1 %v1077_v0  ;;  %vm586_vm3 = vcmp.eq.s32.totalorder %v584_v24, 1  ;;  %vm589_vm4 = vcmp.eq.s32.totalorder %v584_v24, 2  ;;  %vm592_vm5 = vcmp.eq.s32.totalorder %v584_v24, 3 }
 0x182   :  { %786 = vmatprep.subr.bf16.mxu0 %v1077_v0  ;;  %768 = vmatprep.mubr.msk.bf16.mxu1 %vm1078_vm0, %v1077_v0 }
 0x183   :  { %788 = vmatprep.mubr.msk.bf16.mxu0 %vm1078_vm0, %v1077_v0 }
 0x184   :  { %767 = vmatpush3.bf16.msra.mxu1 %v1244_v2 }
 0x185   :  { %787 = vmatpush3.bf16.msra.mxu0 %v1244_v2  ;;  %772 = vmatprep.subr.bf16.mxu1 %v1077_v0 }
 0x186   :  { %792 = vmatprep.subr.bf16.mxu0 %v1077_v0 }
 0x187   :  { %769 = vmatmul.mubr.msk.bf16.vlgmr.msra.gmra.mrb[8].mxu1 %vm153_vm1, %v387_v28 }
 0x188   :  { %789 = vmatmul.mubr.msk.bf16.vlgmr.msra.gmra.mrb[8].mxu0 %vm153_vm1, %v484_v29  ;;  %773 = vmatpush3.bf16.msra.mxu1 %v833_v7 }
 0x189   :  { %793 = vmatpush3.bf16.msra.mxu0 %v833_v7  ;;  %774 = vmatprep.subr.bf16.mxu1 %v1077_v0 }
 0x18a   :  { %794 = vmatprep.subr.bf16.mxu0 %v1077_v0  ;;  %780 = vmatprep.mubr.msk.bf16.mxu1 %vm1078_vm0, %v1077_v0 }
 0x18b   :  { %800 = vmatprep.mubr.msk.bf16.mxu0 %vm1078_vm0, %v1077_v0 }
 0x18c   :  { %775 = vmatpush3.bf16.msra.mxu1 %v834_v8 }
 0x18d   :  { %795 = vmatpush3.bf16.msra.mxu0 %v834_v8  ;;  %776 = vmatprep.subr.bf16.mxu1 %v1077_v0 }
 0x18e   :  { %796 = vmatprep.subr.bf16.mxu0 %v1077_v0 }
 0x190   :  { %777 = vmatpush3.bf16.msra.mxu1 %v835_v9 }
 0x191   :  { %797 = vmatpush3.bf16.msra.mxu0 %v835_v9  ;;  %778 = vmatprep.subr.bf16.mxu1 %v1077_v0 }
 0x192   :  { %798 = vmatprep.subr.bf16.mxu0 %v1077_v0 }
 0x194   :  { %779 = vmatpush3.bf16.msra.mxu1 %v836_v10 }
 0x195   :  { %799 = vmatpush3.bf16.msra.mxu0 %v836_v10 }
 0x252   :  { %v269_v30 = vpop.f32.mrb[4].mxu1 }
 0x253   :  { %v275_v31 = vpack.c.bf16 %v269_v30, %v269_v30  ;;  %v742_v32 = vpop.f32.mrb[5].mxu1  ;;  %v373_v33 = vpop.f32.mrb[4].mxu0 }
 0x254   :  { %v379_v34 = vpack.c.bf16 %v373_v33, %v373_v33  ;;  %v272_v35 = vpop.f32.mrb[6].mxu1  ;;  %v762_v36 = vpop.f32.mrb[5].mxu0 }
 0x255   :  { %841 = vtanh.bf16 %v275_v31  ;;  %v743_v37 = vpop.f32.mrb[7].mxu1  ;;  %v376_v38 = vpop.f32.mrb[6].mxu0 }
 0x256   :  { %843 = vtanh.bf16 %v379_v34  ;;  %v763_v39 = vpop.f32.mrb[7].mxu0 }
 0x25a   :  { %v425_v40 = vpop.f32.mrb[8].mxu1 }
 0x25b   :  { %v426_v41 = vadd.f32 %v1274_v11, %v425_v40  ;;  %v770_v42 = vpop.f32.mrb[9].mxu1  ;;  %v522_v43 = vpop.f32.mrb[8].mxu0 }
 0x25c   :  { %v523_v44 = vadd.f32 %v1274_v11, %v522_v43  ;;  %v428_v45 = vpop.f32.mrb[10].mxu1  ;;  %v790_v46 = vpop.f32.mrb[9].mxu0 }
 0x25d   :  { %v431_v47 = vpack.c.bf16 %v426_v41, %v426_v41  ;;  %v771_v48 = vpop.f32.mrb[11].mxu1  ;;  %v525_v49 = vpop.f32.mrb[10].mxu0  ;;  %v1082_v41 = vmov 0  }
 0x25e   :  { %v528_v50 = vpack.c.bf16 %v523_v44, %v523_v44  ;;  %v791_v51 = vpop.f32.mrb[11].mxu0  ;;  %827 = vset.pattern.permute.xlu0 %v1082_v41  ;;  %v1083_v48 = vmov 1  }
 0x25f   :  { %845 = vtanh.bf16 %v431_v47  ;;  %828 = vset.pattern.permute.xlu1 %v1083_v48  ;;  %v1087_v51 = vmov 3  }
 0x260   :  { %v842_v52 = vpop.eup %841  ;;  %847 = vtanh.bf16 %v528_v50 }
 0x261   :  { %v844_v54 = vpop.eup %843  ;;  %v277_v55 = vunpack.c.l.bf16 %v842_v52 }
 0x262   :  { %v381_v56 = vunpack.c.l.bf16 %v844_v54 }
 0x263   :  { %v285_v57 = vmul.f32 %v685_v53, %v277_v55 }
 0x264   :  { %v382_v58 = vmul.f32 %v685_v53, %v381_v56 }
 0x265   :  { %v286_v59 = vsel %vm153_vm1, %v285_v57, 0.0 }
 0x266   :  { %287 = vadd.xlane.f32.xlu0 %v286_v59  ;;  %v383_v60 = vsel %vm153_vm1, %v382_v58, 0.0  ;;  %v1088_v58 = vmov 2  }
 0x26a   :  { %v846_v61 = vpop.eup %845  ;;  %384 = vadd.xlane.f32.xlu0 %v383_v60 }
 0x26b   :  { %v848_v62 = vpop.eup %847  ;;  %781 = vmatmul.mubr.msk.bf16.vlgmr.msra.gmra.mrb[12].mxu1 %vm231_vm2, %v846_v61 }
 0x26c   :  { %801 = vmatmul.mubr.msk.bf16.vlgmr.msra.gmra.mrb[12].mxu0 %vm231_vm2, %v848_v62 }
 0x2f3   :  { %v288_v19 = vpop.xlane.xlu0 %287 }
 0x2f7   :  { %v385_v20 = vpop.xlane.xlu0 %384 }
 0x2f8   :  { %v580_v23 = vmax.f32 %v288_v19, %v385_v20 }
 0x33e   :  { %v470_v63 = vpop.f32.mrb[12].mxu1 }
 0x33f   :  { %v476_v0 = vpack.c.bf16 %v470_v63, %v470_v63  ;;  %v782_v1 = vpop.f32.mrb[13].mxu1  ;;  %v567_v2 = vpop.f32.mrb[12].mxu0 }
 0x340   :  { %v573_v5 = vpack.c.bf16 %v567_v2, %v567_v2  ;;  %v473_v6 = vpop.f32.mrb[14].mxu1  ;;  %v802_v7 = vpop.f32.mrb[13].mxu0 }
 0x341   :  { %849 = vtanh.bf16 %v476_v0  ;;  %v783_v8 = vpop.f32.mrb[15].mxu1  ;;  %v570_v9 = vpop.f32.mrb[14].mxu0 }
 0x342   :  { %851 = vtanh.bf16 %v573_v5  ;;  %v803_v10 = vpop.f32.mrb[15].mxu0 }
 0x34c   :  { %v850_v11 = vpop.eup %849 }
 0x34d   :  { %v852_v12 = vpop.eup %851  ;;  %v478_v13 = vunpack.c.l.bf16 %v850_v11 }
 0x34e   :  { %v575_v14 = vunpack.c.l.bf16 %v852_v12 }
 0x34f   :  { %v479_v15 = vmul.f32 %v685_v53, %v478_v13 }
 0x350   :  { %v576_v16 = vmul.f32 %v685_v53, %v575_v14 }
 0x351   :  { %v480_v17 = vsel %vm153_vm1, %v479_v15, 0.0 }
 0x352   :  { %481 = vadd.xlane.f32.xlu1 %v480_v17  ;;  %v577_v18 = vsel %vm153_vm1, %v576_v16, 0.0 }
 0x356   :  { %578 = vadd.xlane.f32.xlu1 %v577_v18 }
 0x3df   :  { %v482_v22 = vpop.xlane.xlu1 %481 }
 0x3e0   :  { %v581_v25 = vmax.f32 %v580_v23, %v482_v22 }
 0x3e3   :  { %v579_v28 = vpop.xlane.xlu1 %578 }
 0x3e4   :  { %v582_v29 = vmax.f32 %v581_v25, %v579_v28 }
 0x3e6   :  { %v585_v30 = vsub.f32 %v288_v19, %v582_v29  ;;  %v587_v31 = vsub.f32 %v385_v20, %v582_v29  ;;  %v590_v32 = vsub.f32 %v482_v22, %v582_v29  ;;  %v593_v34 = vsub.f32 %v579_v28, %v582_v29 }
 0x3e8   :  { %v588_v33 = vsel %vm586_vm3, %v587_v31, %v585_v30 }
 0x3e9   :  { %v591_v35 = vsel %vm589_vm4, %v590_v32, %v588_v33 }
 0x3ea   :  { %v594_v36 = vsel %vm592_vm5, %v593_v34, %v591_v35 }
 0x3eb   :  { %v595_v37 = vpack.c.bf16 %v594_v36, %v594_v36 }
 0x3ed   :  { %v597_v38 = vmul.bf16 1069105081, %v595_v37 }
 0x3ef   :  { %853 = vpow.bf16 %v597_v38 }
 0x3fa   :  { %v854_v39 = vpop.eup %853 }
 0x3fb   :  { %v599_v40 = vunpack.c.l.bf16 %v854_v39 }
 0x3fd   :  { %605 = vrot.lane.b32.xlu1 %v599_v40, %s1079_s7  ;;  %601 = vrot.lane.b32.xlu0 %v599_v40, %s1080_s2 }
 0x401   :  { %609 = vrot.lane.b32.xlu1 %v599_v40, %s1081_s26 }
 0x46f   :  { %v606_v42 = vpop.permute.xlu1 %605  ;;  %v602_v43 = vpop.permute.xlu0 %601 }
 0x470   :  { %v604_v44 = vadd.f32 %v602_v43, %v599_v40 }
 0x472   :  { %v608_v45 = vadd.f32 %v606_v42, %v604_v44 }
 0x473   :  { %v610_v46 = vpop.permute.xlu1 %609 }
 0x474   :  { %v612_v47 = vadd.f32 %v610_v46, %v608_v45 }
 0x476   :  { %855 = vrcp.f32 %v612_v47 }
 0x480   :  { %v856_v49 = vpop.eup %855 }
 0x481   :  { %634 = vrot.lane.b32.xlu0 %v856_v49, %s1084_s1  ;;  %623 = vrot.lane.b32.xlu1 %v856_v49, %s1085_s5  ;;  %v615_v50 = vmul.f32 %v856_v49, %v599_v40 }
 0x485   :  { %645 = vrot.lane.b32.xlu1 %v856_v49, %s1086_s27  ;;  %618 = vperm.xlu0 %827, %v615_v50  }
 0x489   :  { %830 = vset.pattern.permute.xlu0 %v1087_v51 }
 0x4f3   :  { %v624_v52 = vpop.permute.xlu1 %623  ;;  %v635_v54 = vpop.permute.xlu0 %634 }
 0x4f4   :  { %v626_v53 = vmul.f32 %v624_v52, %v599_v40  ;;  %v637_v57 = vmul.f32 %v635_v54, %v599_v40 }
 0x4f6   :  { %629 = vperm.xlu1 %828, %v626_v53  }
 0x4f7   :  { %v646_v55 = vpop.permute.xlu1 %645 }
 0x4f8   :  { %v648_v56 = vmul.f32 %v646_v55, %v599_v40 }
 0x4fa   :  { %829 = vset.pattern.permute.xlu1 %v1088_v58  ;;  %651 = vperm.xlu0 %830, %v648_v56  }
 0x4fb   :  { %640 = vperm.xlu1 %829, %v637_v57  }
 0x504   :  { %v619_v60 = vpop.permute.xlu0 %618 }
 0x505   :  { %v621_v62 = vmul.f32 %v619_v60, %v1246_v3 }
 0x575   :  { %v630_v59 = vpop.permute.xlu1 %629 }
 0x576   :  { %v632_v61 = vmul.f32 %v630_v59, %v1248_v4 }
 0x578   :  { %v633_v1 = vadd.f32 %v632_v61, %v621_v62 }
 0x579   :  { %v652_v63 = vpop.permute.xlu0 %651 }
 0x57a   :  { %v641_v0 = vpop.permute.xlu1 %640  ;;  %v654_v5 = vmul.f32 %v652_v63, %v1283_v27 }
 0x57b   :  { %v643_v2 = vmul.f32 %v641_v0, %v1280_v26 }
 0x57d   :  { %v644_v6 = vadd.f32 %v643_v2, %v633_v1 }
 0x57f   :  { %v655_v7 = vadd.f32 %v654_v5, %v644_v6 }
 0x581   :  { %656 = vst.msk [vmem:[#allocation16] sm:$0xff] %vm153_vm1, %v655_v7 }
 0x582   :  { %1044 = shalt.err (!%p1041_p12)
}
 0x583   :  { %s1045_s14 = scalar_lea.hbm %s1343_s8, 128 }
 0x584   :  { %p1046_p13 = scmp.ne.s32.totalorder %s1343_s8, %s1045_s14  ;;  %p1049_p0 = scmp.lt.u32.totalorder %s1045_s14, %s1343_s8 }
 0x586   :  { %p1051_p1 = pnand %p1049_p0, %p1046_p13 }
 0x588   :  { %1054 = shalt.err (!%p1051_p1)
}
 0x589   :  { %666 = dma.vmem_to_hbm [thread:$0]  %s664_s29, 128, %s1343_s8, [#allocation4]  }
 0x58a   :  { %1065 = dma.done.wait [#allocation4], 128  }
 0x58b   :  { %1066 = vsyncadd [#allocation4], 4294967168 }
 0x58c   :  { %670 = vsyncpa [#allocation3], 1 }
 0x58d   :  { %671 = vsyncpa [#allocation6], 1 }
 0x58e   :  { %672 = vsyncpa [#allocation9], 1 }
 0x58f   :  { %673 = vsyncpa [#allocation12], 1 }
 0x590   :  { %674 = vsyncpa [#allocation15], 1 }
 0x591   :  { %675 = vsyncpa [#allocation4], 1 }

</bundles_post_ra>
